<compile_context>
chip_gen: v5e
topology: v5e:2x2
jax: 0.10.0
libtpu: 0.0.40
codegen_flags: <defaults>
</compile_context>

<pallas_src>
import functools
import math

import jax
import jax.numpy as jnp
from jax.experimental import pallas as pl
from jax.experimental.pallas import tpu as pltpu


def _round_up(x, m):
    return ((x + m - 1) // m) * m


def _vmem_capacity_bytes():
    try:
        return int(pltpu.get_tpu_info().vmem_capacity_bytes)
    except Exception:
        return 64 << 20  # conservative default (v7x-sized VMEM)


def _target_block_bytes():
    # Bigger streaming blocks on 128-MiB-VMEM parts (v5e/v6e), 2 MiB on v7x.
    return (4 << 20) if _vmem_capacity_bytes() >= (100 << 20) else (2 << 20)


def _vmem_limit_bytes(block_elems, io_itemsize):
    cap = _vmem_capacity_bytes()
    # in+out double-buffered I/O blocks plus a handful of f32 temporaries.
    need = block_elems * (4 * io_itemsize + 8 * 4) + (4 << 20)
    ceiling = int(cap * 0.7)
    floor = min(32 << 20, ceiling)
    return int(min(max(need, floor), ceiling))


# --------------------------- channels_last kernels ---------------------------
def _ln_last_g1_kernel(x_ref, wb_ref, o_ref, *, eps):
    # x_ref : (tile_rows, C), C already a multiple of 128 (lane-dense).
    x = x_ref[...].astype(jnp.float32)
    w = wb_ref[0:1, :].astype(jnp.float32)
    b = wb_ref[1:2, :].astype(jnp.float32)
    mean = jnp.mean(x, axis=-1, keepdims=True)
    xc = x - mean
    var = jnp.mean(xc * xc, axis=-1, keepdims=True)
    inv = jax.lax.rsqrt(var + eps)
    o_ref[...] = (xc * inv * w + b).astype(o_ref.dtype)


def _ln_last_packed_kernel(x_ref, wb_ref, s_ref, st_ref, o_ref, *, eps, c):
    # x_ref : (tile_rows, Cp) with Cp = g*c ; each contiguous chunk of c lanes
    #         is one logical row's channels.
    # wb_ref: (2, Cp)  row 0 = weight tiled g times, row 1 = bias tiled.
    # s_ref : (Cp, g), st_ref : (g, Cp) -- constant 0/1 segment matrices,
    #         precomputed in the wrapper and resident in VMEM.
    x = x_ref[...].astype(jnp.float32)
    w = wb_ref[0:1, :].astype(jnp.float32)
    b = wb_ref[1:2, :].astype(jnp.float32)
    S = s_ref[...]
    St = st_ref[...]

    inv_c = 1.0 / c
    hi = jax.lax.Precision.HIGHEST
    # Chained segment reduction: per-logical-row sums via tiny MXU matmuls
    # (exact f32 at HIGHEST precision, ~8g flops/element -> stays HBM-bound).
    mean_g = jnp.dot(x, S, preferred_element_type=jnp.float32,
                     precision=hi) * inv_c                    # (tile, g)
    mean = jnp.dot(mean_g, St, preferred_element_type=jnp.float32,
                   precision=hi)                              # (tile, Cp)
    xc = x - mean
    var_g = jnp.dot(xc * xc, S, preferred_element_type=jnp.float32,
                    precision=hi) * inv_c                     # (tile, g)
    var = jnp.dot(var_g, St, preferred_element_type=jnp.float32,
                  precision=hi)                               # (tile, Cp)
    inv = jax.lax.rsqrt(var + eps)
    o_ref[...] = (xc * inv * w + b).astype(o_ref.dtype)


def _pick_tile_rows(rp, cp, itemsize, target):
    t = max(8, (target // max(cp * itemsize, 1)) // 8 * 8)
    if rp > 16:
        # Keep at least 2 grid steps so dual-TC parts (v7x) get balanced work.
        t = min(t, _round_up(pl.cdiv(rp, 2), 8))
    if t >= rp:
        return int(rp)  # single full-extent block (allowed regardless of 8|rp)
    return int(t)


def _layer_norm_channels_last(x, weight, bias, eps):
    orig_shape = x.shape
    C = int(orig_shape[-1])
    x2d = x.reshape(-1, C)
    R = x2d.shape[0]
    itemsize = jnp.dtype(x.dtype).itemsize
    target = _target_block_bytes()

    # Lane-packing factor: g logical rows share a group of 128 lanes so the
    # minor dim Cp = g*C is a multiple of 128 (unmasked lane-dense stores).
    g = 128 // math.gcd(C, 128)
    if g > 1 and g * C > 4096:   # pathological widths: keep packed rows sane
        g = 1
    Cp = g * C

    # Pad ONLY to a multiple of g (needed for the free contiguous reshape).
    R_g = _round_up(R, g)
    if R_g != R:
        x2d = jnp.pad(x2d, ((0, R_g - R), (0, 0)))
    Rp = R_g // g
    xp = x2d.reshape(Rp, Cp)     # contiguous reshape -> no HBM copy

    # Single fused (2, Cp) weight/bias operand (one resident DMA stream).
    wb = jnp.stack([jnp.tile(weight.reshape(-1), g),
                    jnp.tile(bias.reshape(-1), g)], axis=0)

    tile_rows = _pick_tile_rows(Rp, Cp, itemsize, target)
    grid = (pl.cdiv(Rp, tile_rows),)   # partial final block handled by Pallas

    compiler_params = pltpu.CompilerParams(
        dimension_semantics=("parallel",),
        vmem_limit_bytes=_vmem_limit_bytes(tile_rows * Cp, itemsize),
    )

    if g == 1:
        yp = pl.pallas_call(
            functools.partial(_ln_last_g1_kernel, eps=float(eps)),
            out_shape=jax.ShapeDtypeStruct((Rp, Cp), x.dtype),
            grid=grid,
            in_specs=[
                pl.BlockSpec((tile_rows, Cp), lambda i: (i, 0)),
                pl.BlockSpec((2, Cp), lambda i: (0, 0)),
            ],
            out_specs=pl.BlockSpec((tile_rows, Cp), lambda i: (i, 0)),
            compiler_params=compiler_params,
        )(xp, wb)
    else:
        # Constant 0/1 segment matrices, hoisted out of the kernel body.
        lane_seg = jnp.arange(Cp, dtype=jnp.int32) // C
        S = (lane_seg[:, None] ==
             jnp.arange(g, dtype=jnp.int32)[None, :]).astype(jnp.float32)
        St = jnp.transpose(S)
        yp = pl.pallas_call(
            functools.partial(_ln_last_packed_kernel, eps=float(eps), c=C),
            out_shape=jax.ShapeDtypeStruct((Rp, Cp), x.dtype),
            grid=grid,
            in_specs=[
                pl.BlockSpec((tile_rows, Cp), lambda i: (i, 0)),
                pl.BlockSpec((2, Cp), lambda i: (0, 0)),
                pl.BlockSpec((Cp, g), lambda i: (0, 0)),
                pl.BlockSpec((g, Cp), lambda i: (0, 0)),
            ],
            out_specs=pl.BlockSpec((tile_rows, Cp), lambda i: (i, 0)),
            compiler_params=compiler_params,
        )(xp, wb, S, St)

    y2d = yp.reshape(R_g, C)
    if R_g != R:
        y2d = y2d[:R]            # only when the tiny g-pad actually triggered
    return y2d.reshape(orig_shape)


# -------------------------- channels_first kernel ---------------------------
def _ln_channels_first_kernel(x_ref, wb_ref, o_ref, *, eps):
    # x_ref : (n_tile, C, hw) -- reduce over the sublane (C) axis; the NCHW
    #         tensor is never transposed.
    # wb_ref: (2, C, 1)
    x = x_ref[...].astype(jnp.float32)
    mean = jnp.mean(x, axis=1, keepdims=True)       # (n_tile, 1, hw)
    xc = x - mean
    var = jnp.mean(xc * xc, axis=1, keepdims=True)
    inv = jax.lax.rsqrt(var + eps)
    w = wb_ref[0:1].astype(jnp.float32)             # (1, C, 1)
    b = wb_ref[1:2].astype(jnp.float32)
    o_ref[...] = (xc * inv * w + b).astype(o_ref.dtype)


def _layer_norm_channels_first(x, weight, bias, eps):
    N, C, H, W = (int(d) for d in x.shape)
    HW = H * W
    itemsize = jnp.dtype(x.dtype).itemsize
    target = _target_block_bytes()

    x3 = x.reshape(N, C, HW)     # contiguous reshape -> no HBM copy
    wb = jnp.stack([weight.reshape(-1), bias.reshape(-1)], axis=0)
    wb = wb.reshape(2, C, 1)

    per_image = C * HW * itemsize
    if per_image > target and HW >= 256:
        # Large spatial extent: tile lane-dense (128-multiple) over H*W; the
        # partial final block is masked by Pallas -> no padding / no slicing.
        hw_tile = max(128, (target // max(C * itemsize, 1)) // 128 * 128)
        if hw_tile >= HW:
            hw_tile = HW
        grid = (N, pl.cdiv(HW, hw_tile))
        y3 = pl.pallas_call(
            functools.partial(_ln_channels_first_kernel, eps=float(eps)),
            out_shape=jax.ShapeDtypeStruct((N, C, HW), x.dtype),
            grid=grid,
            in_specs=[
                pl.BlockSpec((1, C, hw_tile), lambda n, j: (n, 0, j)),
                pl.BlockSpec((2, C, 1), lambda n, j: (0, 0, 0)),
            ],
            out_specs=pl.BlockSpec((1, C, hw_tile), lambda n, j: (n, 0, j)),
            compiler_params=pltpu.CompilerParams(
                dimension_semantics=("parallel", "parallel"),
                vmem_limit_bytes=_vmem_limit_bytes(C * hw_tile, itemsize)),
        )(x3, wb)
    else:
        # Small spatial extent (late ConvNeXt stages): fold several batch
        # elements into one block so each grid step still streams a big block.
        n_tile = max(1, target // max(per_image, 1))
        n_tile = min(n_tile, N)
        if N >= 2:
            n_tile = min(n_tile, pl.cdiv(N, 2))   # >= 2 steps for dual-TC
        grid = (pl.cdiv(N, n_tile),)              # partial final block OK
        y3 = pl.pallas_call(
            functools.partial(_ln_channels_first_kernel, eps=float(eps)),
            out_shape=jax.ShapeDtypeStruct((N, C, HW), x.dtype),
            grid=grid,
            in_specs=[
                pl.BlockSpec((n_tile, C, HW), lambda i: (i, 0, 0)),
                pl.BlockSpec((2, C, 1), lambda i: (0, 0, 0)),
            ],
            out_specs=pl.BlockSpec((n_tile, C, HW), lambda i: (i, 0, 0)),
            compiler_params=pltpu.CompilerParams(
                dimension_semantics=("parallel",),
                vmem_limit_bytes=_vmem_limit_bytes(n_tile * C * HW, itemsize)),
        )(x3, wb)

    return y3.reshape(N, C, H, W)


# --------------------------------- wrapper -----------------------------------
def layer_norm(x, weight, bias, eps=1e-6, data_format="channels_last"):
    """Pallas equivalent of CrowdConvNext.LayerNorm.forward."""
    if data_format not in ("channels_last", "channels_first"):
        raise NotImplementedError
    if data_format == "channels_last":
        return _layer_norm_channels_last(x, weight, bias, eps)
    return _layer_norm_channels_first(x, weight, bias, eps)


# ------------------------ pure-JAX reference (for checking) ------------------
def _ref_layer_norm(x, weight, bias, eps, data_format):
    if data_format == "channels_last":
        u = jnp.mean(x, axis=-1, keepdims=True)
        s = jnp.mean((x - u) ** 2, axis=-1, keepdims=True)
        return (x - u) / jnp.sqrt(s + eps) * weight + bias
    else:
        u = jnp.mean(x, axis=1, keepdims=True)
        s = jnp.mean((x - u) ** 2, axis=1, keepdims=True)
        xn = (x - u) / jnp.sqrt(s + eps)
        return weight[None, :, None, None] * xn + bias[None, :, None, None]


if __name__ == "__main__":
    key = jax.random.PRNGKey(0)
    keys = jax.random.split(key, 12)
    eps = 1e-6

    def make_params(k, C):
        kw, kb = jax.random.split(k)
        w = jnp.ones((C,), jnp.float32) + 0.1 * jax.random.normal(kw, (C,), jnp.float32)
        b = jnp.zeros((C,), jnp.float32) + 0.1 * jax.random.normal(kb, (C,), jnp.float32)
        return w, b

    # 1) channels_first, NCHW (2, 32, 8, 8): batch-folded sublane-reduce path
    C1 = 32
    w1, b1 = make_params(keys[0], C1)
    x_cf = jax.random.normal(keys[1], (2, C1, 8, 8), jnp.float32)
    y_cf = layer_norm(x_cf, w1, b1, eps, data_format="channels_first")

    # 2) channels_last (2, 8, 8, 32): lane-packed path (g = 4, Cp = 128)
    x_cl = jax.random.normal(keys[2], (2, 8, 8, C1), jnp.float32)
    y_cl = layer_norm(x_cl, w1, b1, eps, data_format="channels_last")

    # 3) channels_last, ragged rows + C = 48 (now packed: g = 8, Cp = 384)
    C3 = 48
    w3, b3 = make_params(keys[3], C3)
    x_cl_r = jax.random.normal(keys[4], (2, 7, 7, C3), jnp.float32)
    y_cl_r = layer_norm(x_cl_r, w3, b3, eps, data_format="channels_last")

    # 4) channels_first with unaligned spatial size (H*W = 63, no padding)
    C4 = 16
    w4, b4 = make_params(keys[5], C4)
    x_cf_r = jax.random.normal(keys[6], (2, C4, 7, 9), jnp.float32)
    y_cf_r = layer_norm(x_cf_r, w4, b4, eps, data_format="channels_first")

    # 5) channels_last, ConvNeXt width 96 (g = 4, Cp = 384), ragged rows
    C5 = 96
    w5, b5 = make_params(keys[7], C5)
    x_cl_96 = jax.random.normal(keys[8], (2, 5, 5, C5), jnp.float32)
    y_cl_96 = layer_norm(x_cl_96, w5, b5, eps, data_format="channels_last")

    # 6) channels_first, larger spatial extent -> H*W-tiled path with a
    #    partial final block (no padding / slicing anywhere).
    C6 = 192
    w6, b6 = make_params(keys[9], C6)
    x_cf_big = jax.random.normal(keys[10], (2, C6, 80, 80), jnp.float32)
    y_cf_big = layer_norm(x_cf_big, w6, b6, eps, data_format="channels_first")

    jax.block_until_ready((y_cf, y_cl, y_cl_r, y_cf_r, y_cl_96, y_cf_big))

    # correctness checks against the pure-JAX reference
    ref_cf = _ref_layer_norm(x_cf, w1, b1, eps, "channels_first")
    ref_cl = _ref_layer_norm(x_cl, w1, b1, eps, "channels_last")
    ref_cl_r = _ref_layer_norm(x_cl_r, w3, b3, eps, "channels_last")
    ref_cf_r = _ref_layer_norm(x_cf_r, w4, b4, eps, "channels_first")
    ref_cl_96 = _ref_layer_norm(x_cl_96, w5, b5, eps, "channels_last")
    ref_cf_big = _ref_layer_norm(x_cf_big, w6, b6, eps, "channels_first")
    assert jnp.max(jnp.abs(y_cf - ref_cf)) < 1e-4
    assert jnp.max(jnp.abs(y_cl - ref_cl)) < 1e-4
    assert jnp.max(jnp.abs(y_cl_r - ref_cl_r)) < 1e-4
    assert jnp.max(jnp.abs(y_cf_r - ref_cf_r)) < 1e-4
    assert jnp.max(jnp.abs(y_cl_96 - ref_cl_96)) < 1e-4
    assert jnp.max(jnp.abs(y_cf_big - ref_cf_big)) < 1e-4

    print("KERNEL_OK")
</pallas_src>

<mosaic_0001>
module attributes {stable_mosaic.version = 11 : i64} {
  func.func @_ln_channels_first_kernel(%arg0: i32, %arg1: memref<1x32x64xf32, #tpu.memory_space<vmem>>, %arg2: memref<2x32x1xf32, #tpu.memory_space<vmem>>, %arg3: memref<1x32x64xf32, #tpu.memory_space<vmem>>) attributes {dimension_semantics = [#tpu.dimension_semantics<parallel>], iteration_bounds = array<i64: 2>, scalar_prefetch = 0 : i64, scratch_operands = 0 : i64, tpu.core_type = #tpu.core_type<tc>, window_params = [{transform_indices = @transform_0, window_bounds = array<i64: 1, 32, 64>}, {pipeline_mode = #tpu.pipeline_mode<synchronous>, transform_indices = @transform_1, window_bounds = array<i64: 2, 32, 1>}, {transform_indices = @transform_2, window_bounds = array<i64: 1, 32, 64>}]} {
    %c0 = arith.constant 0 : index
    %c0_0 = arith.constant 0 : index
    %c0_1 = arith.constant 0 : index
    %0 = vector.load %arg1[%c0, %c0_0, %c0_1] : memref<1x32x64xf32, #tpu.memory_space<vmem>>, vector<1x32x64xf32>
    %cst = arith.constant dense<0.000000e+00> : vector<1x64xf32>
    %1 = vector.multi_reduction <add>, %0, %cst [1] : vector<1x32x64xf32> to vector<1x64xf32>
    %2 = vector.shape_cast %1 : vector<1x64xf32> to vector<1x1x64xf32>
    %cst_2 = arith.constant 3.200000e+01 : f32
    %3 = vector.broadcast %cst_2 : f32 to vector<1x1x64xf32>
    %4 = arith.divf %2, %3 : vector<1x1x64xf32>
    %5 = vector.broadcast %4 : vector<1x1x64xf32> to vector<1x32x64xf32>
    %6 = arith.subf %0, %5 : vector<1x32x64xf32>
    %7 = arith.mulf %6, %6 : vector<1x32x64xf32>
    %cst_3 = arith.constant dense<0.000000e+00> : vector<1x64xf32>
    %8 = vector.multi_reduction <add>, %7, %cst_3 [1] : vector<1x32x64xf32> to vector<1x64xf32>
    %9 = vector.shape_cast %8 : vector<1x64xf32> to vector<1x1x64xf32>
    %cst_4 = arith.constant 3.200000e+01 : f32
    %10 = vector.broadcast %cst_4 : f32 to vector<1x1x64xf32>
    %11 = arith.divf %9, %10 : vector<1x1x64xf32>
    %cst_5 = arith.constant 9.99999997E-7 : f32
    %12 = vector.broadcast %cst_5 : f32 to vector<1x1x64xf32>
    %13 = arith.addf %11, %12 : vector<1x1x64xf32>
    %14 = math.rsqrt %13 : vector<1x1x64xf32>
    %c0_6 = arith.constant 0 : index
    %c0_7 = arith.constant 0 : index
    %c0_8 = arith.constant 0 : index
    %15 = vector.load %arg2[%c0_6, %c0_7, %c0_8] : memref<2x32x1xf32, #tpu.memory_space<vmem>>, vector<1x32x1xf32>
    %c1 = arith.constant 1 : index
    %c0_9 = arith.constant 0 : index
    %c0_10 = arith.constant 0 : index
    %16 = vector.load %arg2[%c1, %c0_9, %c0_10] : memref<2x32x1xf32, #tpu.memory_space<vmem>>, vector<1x32x1xf32>
    %17 = vector.broadcast %14 : vector<1x1x64xf32> to vector<1x32x64xf32>
    %18 = arith.mulf %6, %17 : vector<1x32x64xf32>
    %19 = vector.broadcast %15 : vector<1x32x1xf32> to vector<1x32x64xf32>
    %20 = arith.mulf %18, %19 : vector<1x32x64xf32>
    %21 = vector.broadcast %16 : vector<1x32x1xf32> to vector<1x32x64xf32>
    %22 = arith.addf %20, %21 : vector<1x32x64xf32>
    %c0_11 = arith.constant 0 : index
    %c0_12 = arith.constant 0 : index
    %c0_13 = arith.constant 0 : index
    %23 = vector.load %arg3[%c0_11, %c0_12, %c0_13] : memref<1x32x64xf32, #tpu.memory_space<vmem>>, vector<1x32x64xf32>
    tpu.vector_store %arg3[%c0_11, %c0_12, %c0_13], %22 {strides = array<i32>} : memref<1x32x64xf32, #tpu.memory_space<vmem>>, vector<1x32x64xf32>,
    return
  }
  func.func @transform_0(%arg0: i32) -> (i32, i32, i32) {
    %c0_i32 = arith.constant 0 : i32
    %c0_i32_0 = arith.constant 0 : i32
    %c0_i32_1 = arith.constant 0 : i32
    return %arg0, %c0_i32, %c0_i32_0 : i32, i32, i32
  }
  func.func @transform_1(%arg0: i32) -> (i32, i32, i32) {
    %c0_i32 = arith.constant 0 : i32
    %c0_i32_0 = arith.constant 0 : i32
    %c0_i32_1 = arith.constant 0 : i32
    %c0_i32_2 = arith.constant 0 : i32
    return %c0_i32, %c0_i32_0, %c0_i32_1 : i32, i32, i32
  }
  func.func @transform_2(%arg0: i32) -> (i32, i32, i32) {
    %c0_i32 = arith.constant 0 : i32
    %c0_i32_0 = arith.constant 0 : i32
    %c0_i32_1 = arith.constant 0 : i32
    return %arg0, %c0_i32, %c0_i32_0 : i32, i32, i32
  }
}

</mosaic_0001>

<bundles_post_ra>
// kernel: tpu_custom_call.1
= control target key start
LH: loop header
LB: loop body
LE: loop exit
PB: predicated region body
PF: predicated region fallthrough
CT: control target
= control target key end

     0   :  { %7 = vsyncpa [#allocation3], 0  ;;  %s620_s0 = inlined_call_operand.vmem [shape: f32[2,32,64], index: 0, kind: input, shape index: {}]   ;;  %s621_s1 = inlined_call_operand.vmem [shape: f32[2,32,1], index: 1, kind: input, shape index: {}]   ;;  %s622_s2 = inlined_call_operand.hbm [shape: f32[2,32,64], index: 2, kind: output, shape index: {}]  }
   0x1   :  { %9 = vsyncpa [#allocation3 + $0x1], 0  ;;  %s495_s9 = smov 0   ;;  %s497_s10 = smov 0  }
   0x2   :  { %s499_s11 = smov 0   ;;  %s501_s12 = smov 0  }
   0x3 LB: > { %s516_s13 = sadd.s32 4294967295, %s474_s12   ;;  %s344_s14 = sadd.s32 4294967294, %s474_s12   ;;  %s474_s12 = sphi %s501_s12, %s628_s12   ;;  %s470_s11 = sphi %s499_s11, %s627_s11   ;;  %s466_s10 = sphi %s497_s10, %s626_s10   ;;  %s462_s9 = sphi %s495_s9, %s625_s9  }
   0x4   : > { %s520_s15 = sadd.s32 1, %s474_s12   ;;  %s69_s16 = sadd.s32 1, %s470_s11 }
   0x5   : > { %s66_s17 = ssub.s32 %s474_s12, %s520_s15  ;;  %p79_p0 = scmp.ne.s32.totalorder %s470_s11, %s466_s10 }
   0x6   : > { %p67_p1 = scmp.eq.s32.totalorder %s66_s17, 0  ;;  %p80_p2 = scmp.eq.s32.totalorder %s516_s13, 1 }
   0x7   : > { %p85_p3 = scmp.ne.s32.totalorder %s466_s10, %s462_s9  ;;  %p86_p4 = scmp.eq.s32.totalorder %s344_s14, 1 }
   0x8   : > { %s531_s18 = scalar_select %p67_p1, %s470_s11, %s69_s16  }
   0x9   : > { %p533_p5 = por %p80_p2, %p79_p0  ;;  %p537_p6 = por %p86_p4, %p85_p3 }
   0xa   : > { %p347_p7 = scmp.ge.s32.totalorder %s474_s12, 1  ;;  %p115_p8 = scmp.lt.s32.totalorder %s474_s12, 3 }
   0xc   : > { %p116_p9 = pnand %p347_p7, %p115_p8 }
   0xd   : > { %p137_p10 = scmp.lt.s32.totalorder (!%p116_p9), %s516_s13, 1  ;;  %s134_s23 = sand.u32 (!%p116_p9), 1, %s466_s10  }
   0xe   : > { %119 = sbr.rel (%p116_p9) target bundleno = 159 (0x9f), region = 28  ;;  %s348_s24 = sshll.u32 (!%p116_p9), %s134_s23, 5 }
   0xf   : > { %s136_s25 = scalar_lea.vmem (!%p116_p9), [#allocation2], %s348_s24  ;;  %s361_s26 = sshll.u32 (!%p116_p9), %s516_s13, 5 }
  0x10   : > { %s278_s29 = scalar_lea.hbm (!%p116_p9), %s622_s2, %s361_s26  ;;  %s279_s30 = sshll.u32 (!%p116_p9), %s136_s25, 4  ;;  %s280_s30 = int_to_ptr.vmem [resolvable:$true] %s279_s30 }
  0x11   : > { %s281_s3 = sshll.u32 (!%p116_p9), %s278_s29, 4  ;;  %s432_s8 = scalar_lea.hbm (!%p116_p9), %s622_s2, 64  ;;  %s282_s3 = int_to_ptr.hbm [resolvable:$true] %s281_s3 }
  0x12   : > { %s426_s4 = sshra.s32 (!%p116_p9), %s282_s3, 4  ;;  %s427_s4 = int_to_ptr.hbm [resolvable:$true] %s426_s4 }
  0x13   : > { %v203_v0 = vld [vmem:[%s621_s1 + $0x10] sm:$0xff]  ;;  %v201_v1 = vld [vmem:[%s621_s1] sm:$0xff]  ;;  %v476_v2 = vmov 0   ;;  %s138_s27 = scalar_select %p137_p10, %s516_s13, 1  ;;  %v204_v4 = vld [vmem:[%s621_s1 + $0x18] sm:$0xff]  ;;  %vm146_vm0 = vcmask 523264  }
  0x14   : > { %406 = vset.pattern.permute.xlu1 %v476_v2  ;;  %405 = vset.pattern.permute.xlu0 %v476_v2  ;;  %v351_v3 = vld [vmem:[%s621_s1 + $0x20] sm:$0xff]  ;;  %v202_v5 = vld [vmem:[%s621_s1 + $0x8] sm:$0xff]  ;;  %v354_v7 = vld [vmem:[%s621_s1 + $0x38] sm:$0xff]  ;;  %v477_v18 = vmov 32.0   ;;  %s267_s13 = scalar_lea.sflag [#allocation3], %s134_s23  ;;  %s428_s5 = scalar_lea.hbm %s427_s4, 32 }
  0x15   : > { %226 = vperm.xlu1 %406, %v203_v0   ;;  %216 = vperm.xlu0 %405, %v201_v1   ;;  %v352_v6 = vld [vmem:[%s621_s1 + $0x28] sm:$0xff]  ;;  %s360_s6 = sshll.u32 %s138_s27, 5  ;;  %v353_v8 = vld [vmem:[%s621_s1 + $0x30] sm:$0xff]  ;;  %408 = vrcp.f32 %v477_v18  ;;  %p429_p11 = scmp.ne.s32.totalorder %s427_s4, %s428_s5 }
  0x16   : > { %407 = vset.pattern.permute.xlu2 %v476_v2  ;;  %s141_s14 = scalar_lea.vmem %s620_s0, %s360_s6  ;;  %p433_p0 = scmp.lt.s32.totalorder %s427_s4, %s622_s2 }
  0x17   : > { %240 = vperm.xlu2 %407, %v351_v3   ;;  %v142_v9 = vld [vmem:[%s141_s14] sm:$0xff]  ;;  %v143_v10 = vld [vmem:[%s141_s14 + $0x8] sm:$0xff]  ;;  %v144_v13 = vld [vmem:[%s141_s14 + $0x10] sm:$0xff]  ;;  %p430_p12 = pnand %p429_p11, %p533_p5  ;;  %p434_p1 = scmp.lt.s32.totalorder %s432_s8, %s428_s5 }
  0x18   : > { %v147_v11 = vsel %vm146_vm0, %v142_v9, 0.0  ;;  %v148_v12 = vsel %vm146_vm0, %v143_v10, 0.0  ;;  %v150_v15 = vsel %vm146_vm0, %v144_v13, 0.0  ;;  %v145_v16 = vld [vmem:[%s141_s14 + $0x18] sm:$0xff] }
  0x19   : > { %v149_v14 = vadd.f32 %v148_v12, %v147_v11  ;;  %v152_v19 = vsel %vm146_vm0, %v145_v16, 0.0  ;;  %p431_p13 = pneg %p430_p12  ;;  %p435_p2 = por %p434_p1, %p433_p0 }
  0x1b   : > { %v151_v17 = vadd.f32 %v150_v15, %v149_v14  ;;  %v409_v22 = vpop.eup %408  ;;  %p436_p3 = pnand %p435_p2, %p431_p13 }
  0x1c   : > { %v161_v24 = vmul.f32 32.0, %v409_v22  ;;  %vm165_vm1 = vweird.f32 %v409_v22 }
  0x1d   : > { %231 = vperm.xlu1 %406, %v204_v4   ;;  %221 = vperm.xlu0 %405, %v202_v5   ;;  %v153_v20 = vadd.f32 %v152_v19, %v151_v17 }
  0x1e   : > { %v162_v26 = vsub.f32 1.0, %v161_v24 }
  0x1f   : > { %245 = vperm.xlu2 %407, %v352_v6   ;;  %v154_v21 = vrot.slane %v153_v20, 4 }
  0x20   : > { %v163_v28 = vmul.f32 %v409_v22, %v162_v26 }
  0x21   : > { %v155_v23 = vadd.f32 %v154_v21, %v153_v20 }
  0x22   : > { %v164_v30 = vadd.f32 %v409_v22, %v163_v28 }
  0x23   : > { %v156_v25 = vrot.slane %v155_v23, 2 }
  0x24   : > { %v166_v32 = vsel %vm165_vm1, %v409_v22, %v164_v30 }
  0x25   : > { %255 = vperm.xlu1 %406, %v354_v7   ;;  %250 = vperm.xlu0 %405, %v353_v8   ;;  %v157_v27 = vadd.f32 %v156_v25, %v155_v23 }
  0x27   : > { %v158_v29 = vrot.slane %v157_v27, 1 }
  0x29   : > { %v159_v31 = vadd.f32 %v158_v29, %v157_v27 }
  0x2b   : > { %v167_v33 = vmul.f32 %v166_v32, %v159_v31 }
  0x2d   : > { %v168_v34 = vsub.f32 %v142_v9, %v167_v33  ;;  %v169_v35 = vsub.f32 %v143_v10, %v167_v33  ;;  %v170_v36 = vsub.f32 %v144_v13, %v167_v33  ;;  %v171_v39 = vsub.f32 %v145_v16, %v167_v33 }
  0x2f   : > { %v172_v37 = vmul.f32 %v168_v34, %v168_v34  ;;  %v173_v38 = vmul.f32 %v169_v35, %v169_v35  ;;  %v174_v40 = vmul.f32 %v170_v36, %v170_v36  ;;  %v175_v44 = vmul.f32 %v171_v39, %v171_v39 }
  0x31   : > { %v176_v41 = vsel %vm146_vm0, %v172_v37, 0.0  ;;  %v177_v42 = vsel %vm146_vm0, %v173_v38, 0.0  ;;  %v179_v45 = vsel %vm146_vm0, %v174_v40, 0.0  ;;  %v181_v47 = vsel %vm146_vm0, %v175_v44, 0.0 }
  0x32   : > { %v178_v43 = vadd.f32 %v177_v42, %v176_v41 }
  0x34   : > { %v180_v46 = vadd.f32 %v179_v45, %v178_v43 }
  0x36   : > { %v182_v48 = vadd.f32 %v181_v47, %v180_v46 }
  0x38   : > { %v183_v49 = vrot.slane %v182_v48, 4 }
  0x3a   : > { %v184_v50 = vadd.f32 %v183_v49, %v182_v48 }
  0x3c   : > { %v185_v51 = vrot.slane %v184_v50, 2 }
  0x3e   : > { %v186_v52 = vadd.f32 %v185_v51, %v184_v50 }
  0x40   : > { %v187_v53 = vrot.slane %v186_v52, 1 }
  0x42   : > { %v188_v54 = vadd.f32 %v187_v53, %v186_v52 }
  0x44   : > { %v189_v55 = vmul.f32 %v188_v54, %v166_v32 }
  0x46   : > { %v190_v56 = vadd.f32 1e-06, %v189_v55 }
  0x48   : > { %410 = vrsqrt.f32 %v190_v56  ;;  %vm197_vm2 = vweird.f32 %v190_v56 }
  0x4e   : > { %v411_v57 = vpop.eup %410 }
  0x4f   : > { %v192_v58 = vmul.f32 %v411_v57, %v190_v56  ;;  %vm198_vm3 = vweird.f32 %v411_v57 }
  0x50   : > { %vm199_vm4 = vmor %vm197_vm2, %vm198_vm3 }
  0x51   : > { %v193_v59 = vmul.f32 %v411_v57, %v192_v58 }
  0x53   : > { %v194_v60 = vmul.f32 0.5, %v193_v59 }
  0x55   : > { %v195_v61 = vsub.f32 1.5, %v194_v60 }
  0x57   : > { %v196_v62 = vmul.f32 %v411_v57, %v195_v61 }
  0x59   : > { %v200_v63 = vsel %vm199_vm4, %v411_v57, %v196_v62 }
  0x5a   : > { %v210_v0 = vmul.f32 %v200_v63, %v168_v34  ;;  %v211_v6 = vmul.f32 %v200_v63, %v169_v35  ;;  %v212_v11 = vmul.f32 %v200_v63, %v170_v36  ;;  %v213_v12 = vmul.f32 %v200_v63, %v171_v39 }
  0x71   : > { %v241_v1 = vpop.permute.xlu2 %240 }
  0x79   : > { %v246_v10 = vpop.permute.xlu2 %245 }
  0x87   : > { %v227_v2 = vpop.permute.xlu1 %226  ;;  %v217_v3 = vpop.permute.xlu0 %216 }
  0x88   : > { %v234_v4 = vmul.f32 %v217_v3, %v210_v0  ;;  %v236_v14 = vmul.f32 %v227_v2, %v212_v11 }
  0x8a   : > { %v258_v5 = vadd.f32 %v241_v1, %v234_v4 }
  0x8c   : > { %262 = vst.msk [vmem:[%s136_s25] sm:$0xff] %vm146_vm0, %v258_v5 }
  0x8f   : > { %v232_v7 = vpop.permute.xlu1 %231  ;;  %v222_v8 = vpop.permute.xlu0 %221 }
  0x90   : > { %v235_v9 = vmul.f32 %v222_v8, %v211_v6  ;;  %v237_v15 = vmul.f32 %v232_v7, %v213_v12 }
  0x92   : > { %v259_v13 = vadd.f32 %v246_v10, %v235_v9 }
  0x94   : > { %263 = vst.msk [vmem:[%s136_s25 + $0x8] sm:$0xff] %vm146_vm0, %v259_v13 }
  0x97   : > { %v256_v16 = vpop.permute.xlu1 %255  ;;  %v251_v17 = vpop.permute.xlu0 %250 }
  0x98   : > { %v261_v18 = vadd.f32 %v256_v16, %v237_v15  ;;  %v260_v19 = vadd.f32 %v251_v17, %v236_v14 }
  0x9a   : > { %265 = vst.msk [vmem:[%s136_s25 + $0x18] sm:$0xff] %vm146_vm0, %v261_v18 }
  0x9b   : > { %264 = vst.msk [vmem:[%s136_s25 + $0x10] sm:$0xff] %vm146_vm0, %v260_v19 }
  0x9c   : > { %439 = shalt.err (!%p436_p3)
}
  0x9d   : > { %s478_s17 = smov 128   ;;  %s479_s21 = smov 8  }
  0x9e   : > { %362 = dma.vmem_to_hbm [thread:$0]  (%p533_p5), %s280_s30, 512, %s282_s3, %s267_s13, %s478_s17, %s478_s17, %s479_s21  }
  0x9f PF: > { %p368_p4 = scmp.ge.s32.totalorder %s474_s12, 2  ;;  %s296_s22 = sand.u32 1, %s462_s9  }
  0xa0   : > { %s297_s23 = scalar_lea.sflag [#allocation3], %s296_s22 }
  0xa1   : > { %p365_p7 = pnand %p368_p4, %p537_p6 }
  0xa3   : > { %p366_p8 = pneg %p365_p7 }
  0xa5   : > { %457 = dma.done.wait (%p366_p8), %s297_s23, 512  }
  0xa6   : > { %459 = vsyncadd (%p366_p8), %s297_s23, 4294966784  ;;  %p12_p9 = scmp.ge.s32.totalorder %s520_s15, 4   ;;  %s625_s9 = smov %s466_s10 }
  0xa7   : > { %s626_s10 = smov %s470_s11  ;;  %s627_s11 = smov %s531_s18 }
  0xa8   : > { %s628_s12 = smov %s520_s15  ;;  %14 = sbr.rel (!%p12_p9) target bundleno = 3 (0x3), region = 64 }
  0xad   :  { %303 = vsyncpa [#allocation3], 1 }
  0xae   :  { %305 = vsyncpa [#allocation3 + $0x1], 1 }

</bundles_post_ra>
